<compile_context>
chip_gen: v6e
topology: v6e:2x2x1
jax: 0.10.0
libtpu: 0.0.40
codegen_flags: <defaults>
</compile_context>

<pallas_src>
import jax
import jax.numpy as jnp
from jax.experimental import pallas as pl
from jax.experimental.pallas import tpu as pltpu

EPS = 1e-5


def _fused_kernel(x_ref, w_ref, g1_ref, b1_ref, g2_ref, b2_ref, o_ref):
    # x_ref : (M, Cin)  f32   -- resident across the whole grid (index_map -> (0,0))
    # w_ref : (Cin, TN) bf16  -- one output-channel tile of the 1x1-conv weight
    # g1/b1 : (1, Cin)  f32   -- BN1 affine (resident)
    # g2/b2 : (1, TN)   f32   -- BN2 affine (per tile)
    # o_ref : (M, TN)   f32
    x = x_ref[...]

    # ---- BatchNorm2d #1 (batch stats over M = N*H*W, per input channel) ----
    # Folded single-pass form:  var = E[x^2] - mean^2, y = x*scale + shift.
    mean1 = jnp.mean(x, axis=0, keepdims=True)
    meansq1 = jnp.mean(x * x, axis=0, keepdims=True)
    var1 = meansq1 - mean1 * mean1
    scale1 = g1_ref[...] * jax.lax.rsqrt(var1 + EPS)
    shift1 = b1_ref[...] - mean1 * scale1

    # ---- ReLU + bf16 cast for the MXU ----
    xh = jnp.maximum(x * scale1 + shift1, 0.0).astype(jnp.bfloat16)

    # ---- Conv2d 1x1 (no bias) == matmul over channels (MXU, f32 accumulate) ----
    y = jnp.dot(xh, w_ref[...], preferred_element_type=jnp.float32)

    # ---- BatchNorm2d #2 (stats over M, per output channel -> tile-local) ----
    mean2 = jnp.mean(y, axis=0, keepdims=True)
    meansq2 = jnp.mean(y * y, axis=0, keepdims=True)
    var2 = meansq2 - mean2 * mean2
    scale2 = g2_ref[...] * jax.lax.rsqrt(var2 + EPS)
    shift2 = b2_ref[...] - mean2 * scale2

    o_ref[...] = (y * scale2 + shift2).astype(o_ref.dtype)


def _pick_tile(cout):
    for t in (512, 256, 128):
        if cout % t == 0:
            return t
    return cout  # small / odd channel counts: single full-width block


def fused_bn_relu_conv_bn(x_nchw, w_oi, g1, b1, g2, b2, *, tn=None):
    """x_nchw: (N, Cin, H, W) f32; w_oi: (Cout, Cin) 1x1-conv weight."""
    N, Cin, H, W = x_nchw.shape
    Cout = w_oi.shape[0]
    M = N * H * W

    if tn is None:
        tn = _pick_tile(Cout)
    tn = min(tn, Cout)
    assert Cout % tn == 0, "Cout must be divisible by the chosen tile width"
    grid = (Cout // tn,)

    # NCHW -> NHWC -> (M, Cin); weight to (Cin, Cout) bf16 so the HBM copy is half-size.
    x2d = jnp.transpose(x_nchw, (0, 2, 3, 1)).reshape(M, Cin)
    w_t = jnp.transpose(w_oi, (1, 0)).astype(jnp.bfloat16)

    g1r = g1.reshape(1, Cin).astype(jnp.float32)
    b1r = b1.reshape(1, Cin).astype(jnp.float32)
    g2r = g2.reshape(1, Cout).astype(jnp.float32)
    b2r = b2.reshape(1, Cout).astype(jnp.float32)

    cost = pl.CostEstimate(
        flops=2 * M * Cin * Cout,
        transcendentals=0,
        bytes_accessed=M * Cin * 4 + Cin * Cout * 2 + M * Cout * 4,
    )

    out2d = pl.pallas_call(
        _fused_kernel,
        out_shape=jax.ShapeDtypeStruct((M, Cout), jnp.float32),
        grid=grid,
        in_specs=[
            pl.BlockSpec((M, Cin), lambda j: (0, 0)),    # x: resident
            pl.BlockSpec((Cin, tn), lambda j: (0, j)),   # weight: tiled over Cout
            pl.BlockSpec((1, Cin), lambda j: (0, 0)),    # gamma1: resident
            pl.BlockSpec((1, Cin), lambda j: (0, 0)),    # beta1:  resident
            pl.BlockSpec((1, tn), lambda j: (0, j)),     # gamma2: per tile
            pl.BlockSpec((1, tn), lambda j: (0, j)),     # beta2:  per tile
        ],
        out_specs=pl.BlockSpec((M, tn), lambda j: (0, j)),
        compiler_params=pltpu.CompilerParams(
            dimension_semantics=("parallel",),  # Cout tiles are independent -> megacore
        ),
        cost_estimate=cost,
    )(x2d, w_t, g1r, b1r, g2r, b2r)

    # (M, Cout) -> (N, H, W, Cout) -> NCHW
    return jnp.transpose(out2d.reshape(N, H, W, Cout), (0, 3, 1, 2))


def _reference(x_nchw, w_oi, g1, b1, g2, b2):
    # Pure-JAX f32 reference (training-mode BN, 1x1 conv as matmul).
    def bn(x, g, b):
        mean = jnp.mean(x, axis=(0, 2, 3), keepdims=True)
        var = jnp.mean((x - mean) ** 2, axis=(0, 2, 3), keepdims=True)
        return (x - mean) / jnp.sqrt(var + EPS) * g.reshape(1, -1, 1, 1) + b.reshape(1, -1, 1, 1)

    h = jnp.maximum(bn(x_nchw, g1, b1), 0.0)
    y = jnp.einsum("nchw,oc->nohw", h, w_oi)
    return bn(y, g2, b2)


if __name__ == "__main__":
    # Small shapes consistent with the module structure (orig: 1x2048x7x7, Cin==Cout).
    N, C, H, W = 2, 256, 8, 8

    key = jax.random.PRNGKey(0)
    kx, kw, kg1, kb1, kg2, kb2 = jax.random.split(key, 6)

    x = jax.random.normal(kx, (N, C, H, W), dtype=jnp.float32)
    w = jax.random.normal(kw, (C, C), dtype=jnp.float32) * (1.0 / jnp.sqrt(C))
    gamma1 = 1.0 + 0.1 * jax.random.normal(kg1, (C,), dtype=jnp.float32)
    beta1 = 0.1 * jax.random.normal(kb1, (C,), dtype=jnp.float32)
    gamma2 = 1.0 + 0.1 * jax.random.normal(kg2, (C,), dtype=jnp.float32)
    beta2 = 0.1 * jax.random.normal(kb2, (C,), dtype=jnp.float32)

    # tn=128 -> grid of 2 Cout tiles even at this small size (exercises the
    # pipelined / parallel path; production 2048 channels would use tn=512).
    out = fused_bn_relu_conv_bn(x, w, gamma1, beta1, gamma2, beta2, tn=128)
    out = jax.block_until_ready(out)

    ref = _reference(x, w, gamma1, beta1, gamma2, beta2)
    assert out.shape == (N, C, H, W)
    # Tolerance is relaxed vs. the pure-f32 reference because the conv runs on
    # the MXU in bf16 (f32 accumulation), per the performance guidance.
    assert jnp.allclose(out, ref, atol=3e-2, rtol=3e-2), "mismatch vs reference"

    print("KERNEL_OK")
</pallas_src>

<mosaic_0001>
module attributes {stable_mosaic.version = 11 : i64} {
  func.func @_fused_kernel(%arg0: i32, %arg1: memref<128x256xf32, #tpu.memory_space<vmem>>, %arg2: memref<256x128xbf16, #tpu.memory_space<vmem>>, %arg3: memref<1x256xf32, #tpu.memory_space<vmem>>, %arg4: memref<1x256xf32, #tpu.memory_space<vmem>>, %arg5: memref<1x128xf32, #tpu.memory_space<vmem>>, %arg6: memref<1x128xf32, #tpu.memory_space<vmem>>, %arg7: memref<128x128xf32, #tpu.memory_space<vmem>>) attributes {dimension_semantics = [#tpu.dimension_semantics<parallel>], iteration_bounds = array<i64: 2>, scalar_prefetch = 0 : i64, scratch_operands = 0 : i64, tpu.core_type = #tpu.core_type<tc>, window_params = [{pipeline_mode = #tpu.pipeline_mode<synchronous>, transform_indices = @transform_0, window_bounds = array<i64: 128, 256>}, {transform_indices = @transform_1, window_bounds = array<i64: 256, 128>}, {pipeline_mode = #tpu.pipeline_mode<synchronous>, transform_indices = @transform_2, window_bounds = array<i64: 1, 256>}, {pipeline_mode = #tpu.pipeline_mode<synchronous>, transform_indices = @transform_3, window_bounds = array<i64: 1, 256>}, {transform_indices = @transform_4, window_bounds = array<i64: 1, 128>}, {transform_indices = @transform_5, window_bounds = array<i64: 1, 128>}, {transform_indices = @transform_6, window_bounds = array<i64: 128, 128>}]} {
    %c0 = arith.constant 0 : index
    %c0_0 = arith.constant 0 : index
    %0 = vector.load %arg1[%c0, %c0_0] : memref<128x256xf32, #tpu.memory_space<vmem>>, vector<128x256xf32>
    %cst = arith.constant dense<0.000000e+00> : vector<256xf32>
    %1 = vector.multi_reduction <add>, %0, %cst [0] : vector<128x256xf32> to vector<256xf32>
    %2 = vector.shape_cast %1 : vector<256xf32> to vector<1x256xf32>
    %cst_1 = arith.constant 1.280000e+02 : f32
    %3 = vector.broadcast %cst_1 : f32 to vector<1x256xf32>
    %4 = arith.divf %2, %3 : vector<1x256xf32>
    %5 = arith.mulf %0, %0 : vector<128x256xf32>
    %cst_2 = arith.constant dense<0.000000e+00> : vector<256xf32>
    %6 = vector.multi_reduction <add>, %5, %cst_2 [0] : vector<128x256xf32> to vector<256xf32>
    %7 = vector.shape_cast %6 : vector<256xf32> to vector<1x256xf32>
    %cst_3 = arith.constant 1.280000e+02 : f32
    %8 = vector.broadcast %cst_3 : f32 to vector<1x256xf32>
    %9 = arith.divf %7, %8 : vector<1x256xf32>
    %10 = arith.mulf %4, %4 : vector<1x256xf32>
    %11 = arith.subf %9, %10 : vector<1x256xf32>
    %c0_4 = arith.constant 0 : index
    %c0_5 = arith.constant 0 : index
    %12 = vector.load %arg3[%c0_4, %c0_5] : memref<1x256xf32, #tpu.memory_space<vmem>>, vector<1x256xf32>
    %cst_6 = arith.constant 9.99999974E-6 : f32
    %13 = vector.broadcast %cst_6 : f32 to vector<1x256xf32>
    %14 = arith.addf %11, %13 : vector<1x256xf32>
    %15 = math.rsqrt %14 : vector<1x256xf32>
    %16 = arith.mulf %12, %15 : vector<1x256xf32>
    %c0_7 = arith.constant 0 : index
    %c0_8 = arith.constant 0 : index
    %17 = vector.load %arg4[%c0_7, %c0_8] : memref<1x256xf32, #tpu.memory_space<vmem>>, vector<1x256xf32>
    %18 = arith.mulf %4, %16 : vector<1x256xf32>
    %19 = arith.subf %17, %18 : vector<1x256xf32>
    %20 = vector.broadcast %16 : vector<1x256xf32> to vector<128x256xf32>
    %21 = arith.mulf %0, %20 : vector<128x256xf32>
    %22 = vector.broadcast %19 : vector<1x256xf32> to vector<128x256xf32>
    %23 = arith.addf %21, %22 : vector<128x256xf32>
    %cst_9 = arith.constant 0.000000e+00 : f32
    %24 = vector.broadcast %cst_9 : f32 to vector<128x256xf32>
    %25 = arith.maximumf %23, %24 : vector<128x256xf32>
    %26 = arith.truncf %25 : vector<128x256xf32> to vector<128x256xbf16>
    %c0_10 = arith.constant 0 : index
    %c0_11 = arith.constant 0 : index
    %27 = vector.load %arg2[%c0_10, %c0_11] : memref<256x128xbf16, #tpu.memory_space<vmem>>, vector<256x128xbf16>
    %cst_12 = arith.constant dense<0.000000e+00> : vector<128x128xf32>
    %28 = tpu.matmul %26, %27, %cst_12 {dimension_numbers = #tpu.dot_dimension_numbers<[1], [0], [0], [1], [0, 0, 1, 1], [], []>} : vector<128x256xbf16>, vector<256x128xbf16>, vector<128x128xf32> -> vector<128x128xf32>
    %cst_13 = arith.constant dense<0.000000e+00> : vector<128xf32>
    %29 = vector.multi_reduction <add>, %28, %cst_13 [0] : vector<128x128xf32> to vector<128xf32>
    %30 = vector.shape_cast %29 : vector<128xf32> to vector<1x128xf32>
    %cst_14 = arith.constant 1.280000e+02 : f32
    %31 = vector.broadcast %cst_14 : f32 to vector<1x128xf32>
    %32 = arith.divf %30, %31 : vector<1x128xf32>
    %33 = arith.mulf %28, %28 : vector<128x128xf32>
    %cst_15 = arith.constant dense<0.000000e+00> : vector<128xf32>
    %34 = vector.multi_reduction <add>, %33, %cst_15 [0] : vector<128x128xf32> to vector<128xf32>
    %35 = vector.shape_cast %34 : vector<128xf32> to vector<1x128xf32>
    %cst_16 = arith.constant 1.280000e+02 : f32
    %36 = vector.broadcast %cst_16 : f32 to vector<1x128xf32>
    %37 = arith.divf %35, %36 : vector<1x128xf32>
    %38 = arith.mulf %32, %32 : vector<1x128xf32>
    %39 = arith.subf %37, %38 : vector<1x128xf32>
    %c0_17 = arith.constant 0 : index
    %c0_18 = arith.constant 0 : index
    %40 = vector.load %arg5[%c0_17, %c0_18] : memref<1x128xf32, #tpu.memory_space<vmem>>, vector<1x128xf32>
    %cst_19 = arith.constant 9.99999974E-6 : f32
    %41 = vector.broadcast %cst_19 : f32 to vector<1x128xf32>
    %42 = arith.addf %39, %41 : vector<1x128xf32>
    %43 = math.rsqrt %42 : vector<1x128xf32>
    %44 = arith.mulf %40, %43 : vector<1x128xf32>
    %c0_20 = arith.constant 0 : index
    %c0_21 = arith.constant 0 : index
    %45 = vector.load %arg6[%c0_20, %c0_21] : memref<1x128xf32, #tpu.memory_space<vmem>>, vector<1x128xf32>
    %46 = arith.mulf %32, %44 : vector<1x128xf32>
    %47 = arith.subf %45, %46 : vector<1x128xf32>
    %48 = vector.broadcast %44 : vector<1x128xf32> to vector<128x128xf32>
    %49 = arith.mulf %28, %48 : vector<128x128xf32>
    %50 = vector.broadcast %47 : vector<1x128xf32> to vector<128x128xf32>
    %51 = arith.addf %49, %50 : vector<128x128xf32>
    %c0_22 = arith.constant 0 : index
    %c0_23 = arith.constant 0 : index
    %52 = vector.load %arg7[%c0_22, %c0_23] : memref<128x128xf32, #tpu.memory_space<vmem>>, vector<128x128xf32>
    tpu.vector_store %arg7[%c0_22, %c0_23], %51 {strides = array<i32>} : memref<128x128xf32, #tpu.memory_space<vmem>>, vector<128x128xf32>,
    return
  }
  func.func @transform_0(%arg0: i32) -> (i32, i32) {
    %c0_i32 = arith.constant 0 : i32
    %c0_i32_0 = arith.constant 0 : i32
    %c0_i32_1 = arith.constant 0 : i32
    return %c0_i32, %c0_i32_0 : i32, i32
  }
  func.func @transform_1(%arg0: i32) -> (i32, i32) {
    %c0_i32 = arith.constant 0 : i32
    %c0_i32_0 = arith.constant 0 : i32
    return %c0_i32, %arg0 : i32, i32
  }
  func.func @transform_2(%arg0: i32) -> (i32, i32) {
    %c0_i32 = arith.constant 0 : i32
    %c0_i32_0 = arith.constant 0 : i32
    %c0_i32_1 = arith.constant 0 : i32
    return %c0_i32, %c0_i32_0 : i32, i32
  }
  func.func @transform_3(%arg0: i32) -> (i32, i32) {
    %c0_i32 = arith.constant 0 : i32
    %c0_i32_0 = arith.constant 0 : i32
    %c0_i32_1 = arith.constant 0 : i32
    return %c0_i32, %c0_i32_0 : i32, i32
  }
  func.func @transform_4(%arg0: i32) -> (i32, i32) {
    %c0_i32 = arith.constant 0 : i32
    %c0_i32_0 = arith.constant 0 : i32
    return %c0_i32, %arg0 : i32, i32
  }
  func.func @transform_5(%arg0: i32) -> (i32, i32) {
    %c0_i32 = arith.constant 0 : i32
    %c0_i32_0 = arith.constant 0 : i32
    return %c0_i32, %arg0 : i32, i32
  }
  func.func @transform_6(%arg0: i32) -> (i32, i32) {
    %c0_i32 = arith.constant 0 : i32
    %c0_i32_0 = arith.constant 0 : i32
    return %c0_i32, %arg0 : i32, i32
  }
}

</mosaic_0001>

<bundles_post_ra>
// kernel: tpu_custom_call.1
= control target key start
LH: loop header
LB: loop body
LE: loop exit
PB: predicated region body
PF: predicated region fallthrough
CT: control target
= control target key end

     0   :  { %11 = vsyncpa [#allocation3], 0  ;;  %s2083_s0 = inlined_call_operand.hbm [shape: f32[128,256], index: 0, kind: input, shape index: {}]   ;;  %s2084_s1 = inlined_call_operand.hbm [shape: bf16[256,256], index: 1, kind: input, shape index: {}]   ;;  %s2085_s2 = inlined_call_operand.vmem [shape: f32[1,256], index: 2, kind: input, shape index: {}]   ;;  %s2086_s3 = inlined_call_operand.vmem [shape: f32[1,256], index: 3, kind: input, shape index: {}]   ;;  %s2087_s4 = inlined_call_operand.vmem [shape: f32[1,256], index: 4, kind: input, shape index: {}]   ;;  %s2088_s5 = inlined_call_operand.vmem [shape: f32[1,256], index: 5, kind: input, shape index: {}]   ;;  %s2089_s6 = inlined_call_operand.hbm [shape: f32[128,256], index: 6, kind: output, shape index: {}]  }
   0x1   :  { %12 = vsyncpa [#allocation6], 0 }
   0x2   :  { %14 = vsyncpa [#allocation6 + $0x1], 0 }
   0x3   :  { %15 = vsyncpa [#allocation4], 0 }
   0x4   :  { %17 = vsyncpa [#allocation4 + $0x1], 0  ;;  %s1489_s21 = smov 0   ;;  %s1491_s22 = smov 0  }
   0x5   :  { %s1493_s23 = smov 0   ;;  %s1495_s24 = smov 0  }
   0x6 LB: > { %s1510_s25 = sadd.s32 4294967295, %s1440_s24   ;;  %s1120_s26 = sadd.s32 4294967294, %s1440_s24   ;;  %s1440_s24 = sphi %s1495_s24, %s2113_s24   ;;  %s1436_s23 = sphi %s1493_s23, %s2112_s23   ;;  %s1432_s22 = sphi %s1491_s22, %s2111_s22   ;;  %s1428_s21 = sphi %s1489_s21, %s2110_s21  }
   0x7   : > { %s1514_s27 = sadd.s32 1, %s1440_s24   ;;  %s51_s28 = sadd.s32 1, %s1436_s23 }
   0x8   : > { %s48_s29 = ssub.s32 %s1440_s24, %s1514_s27  ;;  %p58_p0 = scmp.ne.s32.totalorder %s1436_s23, %s1432_s22 }
   0x9   : > { %p49_p1 = scmp.eq.s32.totalorder %s48_s29, 0  ;;  %p59_p2 = scmp.eq.s32.totalorder %s1440_s24, 0 }
   0xa   : > { %p64_p3 = scmp.ne.s32.totalorder %s1432_s22, %s1428_s21  ;;  %p2093_p4 = scmp.eq.s32.totalorder %s1510_s25, 0 }
   0xb   : > { %s1526_s30 = scalar_select %p49_p1, %s1436_s23, %s51_s28  }
   0xc   : > { %p1528_p5 = por %p59_p2, %p58_p0  ;;  %p1534_p6 = por %p2093_p4, %p64_p3 }
   0xd   : > { %2094 = sst [smem:[#allocation11_spill]] %s1526_s30  ;;  %p182_p7 = scmp.eq.s32.totalorder %s1510_s25, 1 }
   0xe   : > { %s2096_s8 = scalar_select %p1534_p6, 1, 0 }
   0xf   : > { %p188_p8 = scmp.eq.s32.totalorder %s1120_s26, 1  ;;  %p1121_p9 = scmp.ge.s32.totalorder %s1440_s24, 1 }
  0x10   : > { %p195_p10 = scmp.lt.s32.totalorder %s1440_s24, 3  ;;  %p1541_p11 = por %p182_p7, %p58_p0 }
  0x11   : > { %p1545_p12 = por %p188_p8, %p64_p3  ;;  %s1442_s12 = smov [#allocation2]  }
  0x12   : > { %s2097_s9 = scalar_select %p1541_p11, 1, 0 }
  0x13   : > { %s2098_s10 = scalar_select %p1545_p12, 1, 0 }
  0x14   : > { %p1549_p13 = pnand %p1121_p9, %p195_p10  ;;  %s207_s13 = sshll.u32 %s1442_s12, 4  ;;  %s208_s13 = int_to_ptr.vmem [resolvable:$true] %s207_s13 }
  0x15   : > { %p1251_p3 = scmp.lt.s32.totalorder %s1440_s24, 2  ;;  %s227_s15 = sand.u32 1, %s1436_s23  }
  0x16   : > { %s2099_s11 = scalar_select %p1549_p13, 1, 0 }
  0x17   : > { %p1238_p1 = pneg %p1549_p13  ;;  %s1329_s16 = scalar_lea.vmem %s208_s13, 4096 }
  0x18   : > { %p1330_p8 = scmp.ne.s32.totalorder %s208_s13, %s1329_s16  ;;  %p1337_p12 = scmp.lt.s32.totalorder %s208_s13, %s208_s13 }
  0x19   : > { %p1557_p2 = pnand %p1238_p1, %p2093_p4  ;;  %p1338_p11 = scmp.lt.s32.totalorder %s1329_s16, %s1329_s16 }
  0x1b   : > { %p1320_p7 = pneg %p1557_p2  ;;  %p1339_p6 = por %p1338_p11, %p1337_p12 }
  0x1d   : > { %p1332_p9 = pnand %p1330_p8, %p1320_p7 }
  0x1f   : > { %p1333_p10 = pneg %p1332_p9 }
  0x21   : > { %p1340_p13 = pnand %p1339_p6, %p1333_p10 }
  0x23   : > { %1343 = shalt.err (!%p1340_p13)
}
  0x24   : > { %s1443_s17 = smov 256   ;;  %s1444_s18 = smov 16  }
  0x25   : > { %1241 = dma.hbm_to_vmem [thread:$0]  (!%p1557_p2), %s2083_s0, 4096, %s208_s13, [#allocation3], %s1443_s17, %s1443_s17, %s1444_s18  }
  0x26   : > { %p1575_p1 = pnand %p1251_p3, %p1528_p5  ;;  %s1124_s28 = sshll.u32 %s227_s15, 7 }
  0x27   : > { %s1125_s29 = sshll.u32 %s1440_s24, 6  ;;  %s231_s14 = scalar_lea.vmem [#allocation5], %s1124_s28 }
  0x28   : > { %s1583_s30 = scalar_lea.hbm %s2084_s1, %s1125_s29  ;;  %s237_s19 = sshll.u32 %s231_s14, 4  ;;  %s1585_s19 = int_to_ptr.vmem [resolvable:$true] %s237_s19 }
  0x29   : > { %s1587_s7 = scalar_lea.sflag [#allocation6], %s227_s15  ;;  %s1344_s13 = scalar_lea.hbm %s1583_s30, 2048 }
  0x2a   : > { %p1345_p5 = scmp.ne.s32.totalorder %s1583_s30, %s1344_s13  ;;  %p1346_p6 = pneg %p1575_p1 }
  0x2b   : > { %s1349_s20 = scalar_lea.hbm %s2084_s1, 4096  ;;  %p1350_p13 = scmp.lt.s32.totalorder %s1583_s30, %s2084_s1 }
  0x2c   : > { %p1347_p11 = pnand %p1346_p6, %p1345_p5  ;;  %p1351_p2 = scmp.lt.s32.totalorder %s1349_s20, %s1344_s13 }
  0x2e   : > { %p1348_p12 = pneg %p1347_p11  ;;  %p1352_p3 = por %p1351_p2, %p1350_p13 }
  0x30   : > { %p1353_p7 = pnand %p1352_p3, %p1348_p12 }
  0x32   : > { %1356 = shalt.err (!%p1353_p7)
}
  0x33   : > { %s1357_s15 = scalar_lea.vmem %s1585_s19, 2048  ;;  %s1445_s28 = smov [#allocation5]  }
  0x34   : > { %p1358_p8 = scmp.ne.s32.totalorder %s1585_s19, %s1357_s15  ;;  %s1362_s16 = sshll.u32 %s1445_s28, 4  ;;  %s1363_s16 = int_to_ptr.vmem [resolvable:$false] %s1362_s16 }
  0x35   : > { %s1364_s14 = scalar_lea.vmem %s1363_s16, 4096  ;;  %p1365_p5 = scmp.lt.s32.totalorder %s1585_s19, %s1363_s16 }
  0x36   : > { %p1360_p9 = pnand %p1358_p8, %p1346_p6  ;;  %p1366_p11 = scmp.lt.s32.totalorder %s1364_s14, %s1357_s15 }
  0x38   : > { %p1361_p10 = pneg %p1360_p9  ;;  %p1367_p0 = por %p1366_p11, %p1365_p5 }
  0x3a   : > { %p1368_p4 = pnand %p1367_p0, %p1361_p10 }
  0x3c   : > { %1371 = shalt.err (!%p1368_p4)
}
  0x3d   : > { %s1446_s13 = smov 128   ;;  %s1447_s17 = smov 64  }
  0x3e   : > { %s1448_s18 = smov 4   ;;  %p2102_p6 = scmp.ne.s32.totalorder %s2099_s11, 0 }
  0x3f   : > { %1245 = dma.hbm_to_vmem [thread:$0]  (!%p1575_p1), %s1583_s30, 2048, %s1585_s19, %s1587_s7, %s1446_s13, %s1447_s17, %s1448_s18  }
  0x40   : > { %261 = sbr.rel (%p2102_p6) target bundleno = 492 (0x1ec), region = 44  ;;  %p2103_p12 = scmp.eq.s32.totalorder (!%p2102_p6), %s1510_s25, 0 }
  0x45   : > { %1415 = dma.done.wait (%p2103_p12), [#allocation3], 4096   ;;  %p2104_p13 = pmov %p2103_p12 }
  0x46   : > { %s1615_s20 = sand.u32 1, %s1432_s22   ;;  %p2105_p4 = scmp.ne.s32.totalorder %s2096_s8, 0 }
  0x47   : > { %1417 = vsyncadd (%p2104_p13), [#allocation3], 4294963200  ;;  %s1128_s29 = sshll.u32 %s1615_s20, 7  ;;  %s268_s12 = scalar_lea.sflag [#allocation6], %s1615_s20 }
  0x48   : > { %s1621_s30 = scalar_lea.vmem [#allocation5], %s1128_s29 }
  0x49   : > { %1419 = dma.done.wait (%p2105_p4), %s268_s12, 2048  }
  0x4a   : > { %1421 = vsyncadd (%p2105_p4), %s268_s12, 4294965248  ;;  %v1296_v0 = vld [vmem:[%s1621_s30 + $0x78] sm:$0xff]   ;;  %v1298_v2 = vld [vmem:[%s1621_s30 + $0x70] sm:$0xff]   ;;  %p306_p0 = scmp.lt.s32.totalorder %s1510_s25, 1  ;;  %s1147_s18 = sshll.u32 %s1510_s25, 7 }
  0x4b   : > { %v1297_v1 = vld [vmem:[%s1621_s30 + $0x38] sm:$0xff]   ;;  %1150 = vmatprep.subr.bf16.mxu0 %v1296_v0  ;;  %1214 = vmatprep.subr.bf16.mxu1 %v1296_v0  ;;  %v1299_v3 = vld [vmem:[%s1621_s30 + $0x30] sm:$0xff]   ;;  %v1300_v4 = vld [vmem:[%s1621_s30 + $0x68] sm:$0xff]   ;;  %s2016_s12 = scalar_lea.vmem [#allocation7], %s1128_s29  ;;  %s2024_s8 = scalar_lea.hbm %s2089_s6, %s1147_s18 }
  0x4c   : > { %1151 = vmatpush3.bf16.msra.mxu0 %v1297_v1  ;;  %1222 = vmatpush3.bf16.msra.mxu1 %v1297_v1  ;;  %v1301_v5 = vld [vmem:[%s1621_s30 + $0x28] sm:$0xff]   ;;  %v1302_v6 = vld [vmem:[%s1621_s30 + $0x60] sm:$0xff]   ;;  %v1304_v8 = vld [vmem:[%s1621_s30 + $0x58] sm:$0xff]   ;;  %s307_s7 = scalar_select %p306_p0, %s1510_s25, 1 }
  0x4d   : > { %1152 = vmatprep.subr.bf16.mxu0 %v1298_v2  ;;  %1215 = vmatprep.subr.bf16.mxu1 %v1298_v2  ;;  %v1303_v7 = vld [vmem:[%s1621_s30 + $0x20] sm:$0xff]   ;;  %v1305_v9 = vld [vmem:[%s1621_s30 + $0x18] sm:$0xff]   ;;  %v1306_v10 = vld [vmem:[%s1621_s30 + $0x50] sm:$0xff]   ;;  %s1005_s11 = scalar_lea.sflag [#allocation4], %s1615_s20  ;;  %p2106_p2 = scmp.ne.s32.totalorder %s2097_s9, 0 }
  0x4e   : > { %v1638_v11 = vld [vmem:[#allocation2] sm:$0xff]  ;;  %v1640_v12 = vld [vmem:[#allocation2 + $0x8] sm:$0xff]  ;;  %v1642_v13 = vld [vmem:[#allocation2 + $0x10] sm:$0xff]  ;;  %s308_s16 = scalar_lea.vmem %s2087_s4, %s307_s7  ;;  %s311_s17 = scalar_lea.vmem %s2088_s5, %s307_s7 }
  0x4f   : > { %v1644_v14 = vld [vmem:[#allocation2 + $0x18] sm:$0xff]  ;;  %v1646_v15 = vld [vmem:[#allocation2 + $0x20] sm:$0xff]  ;;  %v1648_v16 = vld [vmem:[#allocation2 + $0x28] sm:$0xff]  ;;  %v345_v17 = vadd.f32 %v1642_v13, %v1638_v11  ;;  %v390_v36 = vmul.f32 %v1638_v11, %v1638_v11  ;;  %v392_v37 = vmul.f32 %v1642_v13, %v1642_v13  ;;  %v391_v40 = vmul.f32 %v1640_v12, %v1640_v12  ;;  %s1450_s19 = smov [#allocation7]  }
  0x50   : > { %1153 = vmatpush3.bf16.msra.mxu0 %v1299_v3  ;;  %1223 = vmatpush3.bf16.msra.mxu1 %v1299_v3  ;;  %v1652_v18 = vld [vmem:[#allocation2 + $0x30] sm:$0xff]  ;;  %v366_v19 = vadd.f32 %v1644_v14, %v1640_v12  ;;  %v1657_v21 = vld [vmem:[#allocation2 + $0x38] sm:$0xff]  ;;  %v1308_v23 = vld [vmem:[%s1621_s30 + $0x48] sm:$0xff]   ;;  %v393_v41 = vmul.f32 %v1644_v14, %v1644_v14  ;;  %v394_v44 = vmul.f32 %v1646_v15, %v1646_v15  ;;  %s1376_s7 = sshll.u32 %s1450_s19, 4  ;;  %s1377_s7 = int_to_ptr.vmem [resolvable:$false] %s1376_s7 }
  0x51   : > { %1154 = vmatprep.subr.bf16.mxu0 %v1300_v4  ;;  %1216 = vmatprep.subr.bf16.mxu1 %v1300_v4  ;;  %v1307_v20 = vld [vmem:[%s1621_s30 + $0x10] sm:$0xff]   ;;  %v346_v22 = vadd.f32 %v345_v17, %v1646_v15  ;;  %v1661_v24 = vld [vmem:[#allocation2 + $0x40] sm:$0xff]  ;;  %v1664_v26 = vld [vmem:[#allocation2 + $0x48] sm:$0xff]  ;;  %v395_v48 = vmul.f32 %v1648_v16, %v1648_v16  ;;  %v396_v51 = vmul.f32 %v1652_v18, %v1652_v18  ;;  %s1378_s15 = scalar_lea.vmem %s1377_s7, 4096 }
  0x52   : > { %v367_v25 = vadd.f32 %v366_v19, %v1648_v16  ;;  %v1667_v28 = vld [vmem:[#allocation2 + $0x50] sm:$0xff]  ;;  %v1309_v30 = vld [vmem:[%s1621_s30 + $0x8] sm:$0xff]   ;;  %v1671_v31 = vld [vmem:[#allocation2 + $0x58] sm:$0xff]  ;;  %v422_v52 = vadd.f32 %v392_v37, %v390_v36  ;;  %v397_v55 = vmul.f32 %v1657_v21, %v1657_v21  ;;  %v443_v56 = vadd.f32 %v393_v41, %v391_v40 }
  0x53   : > { %v347_v27 = vadd.f32 %v346_v22, %v1652_v18  ;;  %v1310_v33 = vld [vmem:[%s1621_s30 + $0x40] sm:$0xff]   ;;  %v1682_v38 = vld [vmem:[#allocation2 + $0x68] sm:$0xff]  ;;  %v1689_v42 = vld [vmem:[#allocation2 + $0x70] sm:$0xff]  ;;  %v398_v59 = vmul.f32 %v1661_v24, %v1661_v24  ;;  %v399_v63 = vmul.f32 %v1664_v26, %v1664_v26  ;;  %v400_v3 = vmul.f32 %v1667_v28, %v1667_v28 }
  0x54   : > { %1155 = vmatpush3.bf16.msra.mxu0 %v1301_v5  ;;  %1224 = vmatpush3.bf16.msra.mxu1 %v1301_v5  ;;  %v368_v29 = vadd.f32 %v367_v25, %v1657_v21  ;;  %v1675_v34 = vld [vmem:[#allocation2 + $0x60] sm:$0xff]  ;;  %v1695_v46 = vld [vmem:[#allocation2 + $0x78] sm:$0xff]  ;;  %v1705_v53 = vld [vmem:[#allocation2 + $0x88] sm:$0xff]  ;;  %v423_v60 = vadd.f32 %v422_v52, %v394_v44  ;;  %v444_v0 = vadd.f32 %v443_v56, %v395_v48 }
  0x55   : > { %1156 = vmatprep.subr.bf16.mxu0 %v1302_v6  ;;  %1217 = vmatprep.subr.bf16.mxu1 %v1302_v6  ;;  %v348_v32 = vadd.f32 %v347_v27, %v1661_v24  ;;  %v1311_v45 = vld [vmem:[%s1621_s30] sm:$0xff]   ;;  %v1710_v57 = vld [vmem:[#allocation2 + $0x90] sm:$0xff]  ;;  %v1715_v61 = vld [vmem:[#allocation2 + $0x98] sm:$0xff]  ;;  %v402_v17 = vmul.f32 %v1675_v34, %v1675_v34  ;;  %v405_v36 = vmul.f32 %v1695_v46, %v1695_v46  ;;  %s1017_s30 = sshll.u32 %s2016_s12, 4  ;;  %s2030_s30 = int_to_ptr.vmem [resolvable:$true] %s1017_s30 }
  0x56   : > { %v369_v35 = vadd.f32 %v368_v29, %v1664_v26  ;;  %v1700_v49 = vld [vmem:[#allocation2 + $0x80] sm:$0xff]  ;;  %v424_v4 = vadd.f32 %v423_v60, %v396_v51  ;;  %v1725_v5 = vld [vmem:[#allocation2 + $0xa8] sm:$0xff]  ;;  %v1755_v44 = vld [vmem:[#allocation2 + $0xd8] sm:$0xff]  ;;  %v408_v52 = vmul.f32 %v1710_v57, %v1710_v57  ;;  %s1372_s26 = scalar_lea.vmem %s2030_s30, 2048  ;;  %p1379_p8 = scmp.lt.s32.totalorder %s2030_s30, %s1377_s7 }
  0x57   : > { %v349_v39 = vadd.f32 %v348_v32, %v1667_v28  ;;  %v1720_v1 = vld [vmem:[#allocation2 + $0xa0] sm:$0xff]  ;;  %v406_v41 = vmul.f32 %v1700_v49, %v1700_v49  ;;  %v1770_v60 = vld [vmem:[#allocation2 + $0xf0] sm:$0xff]  ;;  %p1373_p1 = scmp.ne.s32.totalorder %s2030_s30, %s1372_s26  ;;  %p1380_p9 = scmp.lt.s32.totalorder %s1378_s15, %s1372_s26 }
  0x58   : > { %1157 = vmatpush3.bf16.msra.mxu0 %v1303_v7  ;;  %1225 = vmatpush3.bf16.msra.mxu1 %v1303_v7  ;;  %v370_v43 = vadd.f32 %v369_v35, %v1671_v31  ;;  %v401_v7 = vmul.f32 %v1671_v31, %v1671_v31  ;;  %v425_v19 = vadd.f32 %v424_v4, %v398_v59  ;;  %v1740_v27 = vld [vmem:[#allocation2 + $0xc0] sm:$0xff] }
  0x59   : > { %1158 = vmatprep.subr.bf16.mxu0 %v1304_v8  ;;  %1218 = vmatprep.subr.bf16.mxu1 %v1304_v8  ;;  %v350_v47 = vadd.f32 %v349_v39, %v1675_v34  ;;  %v445_v8 = vadd.f32 %v444_v0, %v397_v55  ;;  %v1750_v39 = vld [vmem:[#allocation2 + $0xd0] sm:$0xff]  ;;  %v1765_v55 = vld [vmem:[#allocation2 + $0xe8] sm:$0xff]  ;;  %v411_v4 = vmul.f32 %v1725_v5, %v1725_v5  ;;  %p1374_p3 = pnand %p1373_p1, %p2106_p2  ;;  %p1381_p10 = por %p1380_p9, %p1379_p8 }
  0x5a   : > { %v371_v50 = vadd.f32 %v370_v43, %v1682_v38  ;;  %v426_v32 = vadd.f32 %v425_v19, %v400_v3 }
  0x5b   : > { %v351_v54 = vadd.f32 %v350_v47, %v1689_v42  ;;  %v446_v25 = vadd.f32 %v445_v8, %v399_v63  ;;  %v407_v47 = vmul.f32 %v1705_v53, %v1705_v53  ;;  %v410_v63 = vmul.f32 %v1720_v1, %v1720_v1  ;;  %p1375_p7 = pneg %p1374_p3 }
  0x5c   : > { %1159 = vmatpush3.bf16.msra.mxu0 %v1305_v9  ;;  %1226 = vmatpush3.bf16.msra.mxu1 %v1305_v9  ;;  %v372_v58 = vadd.f32 %v371_v50, %v1695_v46  ;;  %v1730_v9 = vld [vmem:[#allocation2 + $0xb0] sm:$0xff]  ;;  %v427_v43 = vadd.f32 %v426_v32, %v402_v17  ;;  %v1760_v50 = vld [vmem:[#allocation2 + $0xe0] sm:$0xff] }
  0x5d   : > { %1160 = vmatprep.subr.bf16.mxu0 %v1306_v10  ;;  %1219 = vmatprep.subr.bf16.mxu1 %v1306_v10  ;;  %v352_v62 = vadd.f32 %v351_v54, %v1700_v49  ;;  %v447_v37 = vadd.f32 %v446_v25, %v401_v7  ;;  %v412_v8 = vmul.f32 %v1730_v9, %v1730_v9  ;;  %p1382_p5 = pnand %p1381_p10, %p1375_p7 }
  0x5e   : > { %v373_v2 = vadd.f32 %v372_v58, %v1705_v53  ;;  %v409_v58 = vmul.f32 %v1715_v61, %v1715_v61  ;;  %v414_v25 = vmul.f32 %v1740_v27, %v1740_v27 }
  0x5f   : > { %v353_v6 = vadd.f32 %v352_v62, %v1710_v57 }
  0x60   : > { %1161 = vmatpush3.bf16.msra.mxu0 %v1307_v20  ;;  %1227 = vmatpush3.bf16.msra.mxu1 %v1307_v20  ;;  %v374_v10 = vadd.f32 %v373_v2, %v1715_v61  ;;  %v1735_v20 = vld [vmem:[#allocation2 + $0xb8] sm:$0xff] }
  0x61   : > { %1162 = vmatprep.subr.bf16.mxu0 %v1308_v23  ;;  %1220 = vmatprep.subr.bf16.mxu1 %v1308_v23  ;;  %v354_v22 = vadd.f32 %v353_v6, %v1720_v1  ;;  %v403_v23 = vmul.f32 %v1682_v38, %v1682_v38  ;;  %v1775_v2 = vld [vmem:[#allocation2 + $0xf8] sm:$0xff]  ;;  %v413_v19 = vmul.f32 %v1735_v20, %v1735_v20 }
  0x62   : > { %v375_v29 = vadd.f32 %v374_v10, %v1725_v5 }
  0x63   : > { %v355_v35 = vadd.f32 %v354_v22, %v1730_v9  ;;  %v448_v48 = vadd.f32 %v447_v37, %v403_v23  ;;  %v416_v37 = vmul.f32 %v1750_v39, %v1750_v39 }
  0x64   : > { %1163 = vmatpush3.bf16.msra.mxu0 %v1309_v30  ;;  %1228 = vmatpush3.bf16.msra.mxu1 %v1309_v30  ;;  %v404_v30 = vmul.f32 %v1689_v42, %v1689_v42  ;;  %v376_v40 = vadd.f32 %v375_v29, %v1735_v20 }
  0x65   : > { %1164 = vmatprep.subr.bf16.mxu0 %v1310_v33  ;;  %1221 = vmatprep.subr.bf16.mxu1 %v1310_v33  ;;  %v1745_v33 = vld [vmem:[#allocation2 + $0xc8] sm:$0xff]  ;;  %v449_v59 = vadd.f32 %v448_v48, %v405_v36  ;;  %v418_v48 = vmul.f32 %v1760_v50, %v1760_v50 }
  0x66   : > { %v377_v51 = vadd.f32 %v376_v40, %v1745_v33  ;;  %v428_v54 = vadd.f32 %v427_v43, %v404_v30  ;;  %v415_v32 = vmul.f32 %v1745_v33, %v1745_v33  ;;  %v417_v43 = vmul.f32 %v1755_v44, %v1755_v44 }
  0x67   : > { %v450_v6 = vadd.f32 %v449_v59, %v407_v47  ;;  %v420_v59 = vmul.f32 %v1770_v60, %v1770_v60 }
  0x68   : > { %1165 = vmatpush3.bf16.msra.mxu0 %v1311_v45  ;;  %1229 = vmatpush3.bf16.msra.mxu1 %v1311_v45  ;;  %v356_v45 = vadd.f32 %v355_v35, %v1740_v27  ;;  %v378_v62 = vadd.f32 %v377_v51, %v1755_v44  ;;  %v429_v0 = vadd.f32 %v428_v54, %v406_v41 }
  0x69   : > { %v451_v22 = vadd.f32 %v450_v6, %v409_v58  ;;  %v419_v54 = vmul.f32 %v1765_v55, %v1765_v55 }
  0x6a   : > { %v357_v56 = vadd.f32 %v356_v45, %v1750_v39  ;;  %v379_v7 = vadd.f32 %v378_v62, %v1765_v55  ;;  %v430_v10 = vadd.f32 %v429_v0, %v408_v52  ;;  %v421_v0 = vmul.f32 %v1775_v2, %v1775_v2 }
  0x6b   : > { %v452_v35 = vadd.f32 %v451_v22, %v411_v4 }
  0x6c   : > { %v358_v3 = vadd.f32 %v357_v56, %v1760_v50  ;;  %v380_v23 = vadd.f32 %v379_v7, %v1775_v2  ;;  %v431_v29 = vadd.f32 %v430_v10, %v410_v63 }
  0x6d   : > { %v453_v45 = vadd.f32 %v452_v35, %v413_v19 }
  0x6e   : > { %v359_v17 = vadd.f32 %v358_v3, %v1770_v60  ;;  %v381_v36 = vrot.slane %v380_v23, 4  ;;  %v432_v40 = vadd.f32 %v431_v29, %v412_v8 }
  0x6f   : > { %v454_v56 = vadd.f32 %v453_v45, %v415_v32 }
  0x70   : > { %v360_v30 = vrot.slane %v359_v17, 4  ;;  %v382_v47 = vadd.f32 %v381_v36, %v380_v23  ;;  %v433_v51 = vadd.f32 %v432_v40, %v414_v25 }
  0x71   : > { %v455_v3 = vadd.f32 %v454_v56, %v417_v43 }
  0x72   : > { %v361_v41 = vadd.f32 %v360_v30, %v359_v17  ;;  %v383_v58 = vrot.slane %v382_v47, 2  ;;  %v434_v62 = vadd.f32 %v433_v51, %v416_v37 }
  0x73   : > { %v456_v7 = vadd.f32 %v455_v3, %v419_v54  ;;  %v1449_v3 = vmov 1966171168  }
  0x74   : > { %v362_v52 = vrot.slane %v361_v41, 2  ;;  %v384_v4 = vadd.f32 %v383_v58, %v382_v47  ;;  %v435_v6 = vadd.f32 %v434_v62, %v418_v48 }
  0x75   : > { %v457_v19 = vadd.f32 %v456_v7, %v421_v0 }
  0x76   : > { %v363_v63 = vadd.f32 %v362_v52, %v361_v41  ;;  %v436_v10 = vadd.f32 %v435_v6, %v420_v59  ;;  %v385_v17 = vrot.slane %v384_v4, 1  ;;  %v481_v6 = vlaneseq }
  0x77   : > { %v458_v23 = vrot.slane %v457_v19, 4 }
  0x78   : > { %v364_v8 = vrot.slane %v363_v63, 1  ;;  %v437_v22 = vrot.slane %v436_v10, 4  ;;  %v386_v30 = vadd.f32 %v385_v17, %v384_v4  ;;  %v479_v4 = vunpack.c.l.s4 %v1449_v3 }
  0x79   : > { %v459_v32 = vadd.f32 %v458_v23, %v457_v19 }
  0x7a   : > { %v365_v25 = vadd.f32 %v364_v8, %v363_v63  ;;  %v438_v29 = vadd.f32 %v437_v22, %v436_v10  ;;  %v389_v41 = vmul.f32 0.0078125, %v386_v30  ;;  %v480_v7 = vunpack.c.0.s8 %v479_v4 }
  0x7b   : > { %v460_v36 = vrot.slane %v459_v32, 2  ;;  %v482_v8 = vshrl.u32 %v481_v6, 7 }
  0x7c   : > { %v439_v35 = vrot.slane %v438_v29, 2  ;;  %v388_v37 = vmul.f32 0.0078125, %v365_v25  ;;  %v467_v54 = vmul.f32 %v389_v41, %v389_v41  ;;  %v470_v25 = vld [vmem:[%s2085_s2] sm:$0x3] }
  0x7d   : > { %v461_v45 = vadd.f32 %v460_v36, %v459_v32  ;;  %v483_v17 = vsub.s32 %v480_v7, %v482_v8  ;;  %v1806_v30 = vsub.s32 0, %v482_v8  ;;  %v502_v32 = vsub.s32 1, %v482_v8 }
  0x7e   : > { %v440_v40 = vadd.f32 %v439_v35, %v438_v29  ;;  %v466_v51 = vmul.f32 %v388_v37, %v388_v37 }
  0x7f   : > { %v462_v47 = vrot.slane %v461_v45, 1 }
  0x80   : > { %v441_v43 = vrot.slane %v440_v40, 1 }
  0x81   : > { %v463_v52 = vadd.f32 %v462_v47, %v461_v45 }
  0x82   : > { %v442_v48 = vadd.f32 %v441_v43, %v440_v40 }
  0x83   : > { %v465_v58 = vmul.f32 0.0078125, %v463_v52 }
  0x84   : > { %v464_v56 = vmul.f32 0.0078125, %v442_v48 }
  0x85   : > { %v469_v62 = vsub.f32 %v465_v58, %v467_v54 }
  0x86   : > { %v468_v59 = vsub.f32 %v464_v56, %v466_v51  ;;  %v494_v51 = vld [vmem:[%s2086_s3] sm:$0x3] }
  0x87   : > { %v472_v0 = vadd.f32 1e-05, %v469_v62 }
  0x88   : > { %v471_v63 = vadd.f32 1e-05, %v468_v59 }
  0x8a   : > { %1312 = vrsqrt.f32 %v471_v63 }
  0x8b   : > { %1314 = vrsqrt.f32 %v472_v0 }
  0x97   : > { %v1313_v10 = vpop.eup %1312 }
  0x98   : > { %v1315_v19 = vpop.eup %1314 }
  0x99   : > { %v477_v22 = vcombine.low %v1313_v10, %v1315_v19 }
  0x9b   : > { %v484_v23 = vrot.slane %v477_v22, %v483_v17 }
  0x9d   : > { %v491_v29 = vrot.slane %v484_v23, %v483_v17 }
  0x9f   : > { %v493_v35 = vmul.f32 %v491_v29, %v470_v25 }
  0xa1   : > { %v1809_v36 = vrot.slane %v493_v35, %v1806_v30  ;;  %v1811_v40 = vrot.slane %v493_v35, %v502_v32 }
  0xa3   : > { %v506_v45 = vmul.f32 %v1809_v36, %v388_v37  ;;  %v507_v43 = vmul.f32 %v1811_v40, %v389_v41  ;;  %v528_v52 = vmul.f32 %v1811_v40, %v1640_v12  ;;  %v530_v54 = vmul.f32 %v1811_v40, %v1644_v14 }
  0xa4   : > { %v527_v56 = vmul.f32 %v1809_v36, %v1638_v11  ;;  %v529_v37 = vmul.f32 %v1809_v36, %v1642_v13  ;;  %v532_v41 = vmul.f32 %v1811_v40, %v1648_v16  ;;  %v534_v59 = vmul.f32 %v1811_v40, %v1657_v21 }
  0xa5   : > { %v510_v47 = vcombine.low %v506_v45, %v507_v43  ;;  %v531_v62 = vmul.f32 %v1809_v36, %v1646_v15  ;;  %v533_v12 = vmul.f32 %v1809_v36, %v1652_v18  ;;  %v544_v14 = vmul.f32 %v1811_v40, %v1705_v53 }
  0xa6   : > { %v546_v11 = vmul.f32 %v1811_v40, %v1715_v61  ;;  %v543_v13 = vmul.f32 %v1809_v36, %v1700_v49  ;;  %v545_v16 = vmul.f32 %v1809_v36, %v1710_v57  ;;  %v536_v21 = vmul.f32 %v1811_v40, %v1664_v26 }
  0xa7   : > { %v517_v48 = vrot.slane %v510_v47, %v483_v17  ;;  %v538_v15 = vmul.f32 %v1811_v40, %v1671_v31  ;;  %v535_v18 = vmul.f32 %v1809_v36, %v1661_v24  ;;  %v537_v53 = vmul.f32 %v1809_v36, %v1667_v28 }
  0xa8   : > { %v548_v61 = vmul.f32 %v1811_v40, %v1725_v5  ;;  %v550_v26 = vmul.f32 %v1811_v40, %v1735_v20  ;;  %v547_v31 = vmul.f32 %v1809_v36, %v1720_v1  ;;  %v549_v24 = vmul.f32 %v1809_v36, %v1730_v9 }
  0xa9   : > { %v524_v58 = vrot.slane %v517_v48, %v483_v17  ;;  %v540_v28 = vmul.f32 %v1811_v40, %v1682_v38  ;;  %v542_v57 = vmul.f32 %v1811_v40, %v1695_v46  ;;  %v552_v5 = vmul.f32 %v1811_v40, %v1745_v33 }
  0xaa   : > { %v554_v38 = vmul.f32 %v1811_v40, %v1755_v44  ;;  %v551_v46 = vmul.f32 %v1809_v36, %v1740_v27  ;;  %v553_v43 = vmul.f32 %v1809_v36, %v1750_v39 }
  0xab   : > { %v526_v63 = vsub.f32 %v494_v51, %v524_v58 }
  0xad   : > { %v1853_v49 = vrot.slane %v526_v63, %v1806_v30  ;;  %v1855_v0 = vrot.slane %v526_v63, %v502_v32  ;;  %v556_v63 = vmul.f32 %v1811_v40, %v1765_v55 }
  0xaf   : > { %v571_v3 = vadd.f32 %v1855_v0, %v528_v52  ;;  %v573_v4 = vadd.f32 %v1855_v0, %v530_v54  ;;  %v570_v20 = vadd.f32 %v1853_v49, %v527_v56  ;;  %v572_v1 = vadd.f32 %v1853_v49, %v529_v37 }
  0xb0   : > { %v575_v6 = vadd.f32 %v1855_v0, %v532_v41  ;;  %v577_v9 = vadd.f32 %v1855_v0, %v534_v59  ;;  %v574_v22 = vadd.f32 %v1853_v49, %v531_v62  ;;  %v576_v23 = vadd.f32 %v1853_v49, %v533_v12 }
  0xb1   : > { %v603_v7 = vmax.f32 %v571_v3, 0.0  ;;  %v605_v33 = vmax.f32 %v573_v4, 0.0  ;;  %v602_v8 = vmax.f32 %v570_v20, 0.0  ;;  %v604_v10 = vmax.f32 %v572_v1, 0.0 }
  0xb2   : > { %v607_v17 = vmax.f32 %v575_v6, 0.0  ;;  %v609_v19 = vmax.f32 %v577_v9, 0.0  ;;  %v587_v32 = vadd.f32 %v1855_v0, %v544_v14  ;;  %v589_v35 = vadd.f32 %v1855_v0, %v546_v11 }
  0xb3   : > { %v635_v25 = vpack.c.bf16 %v605_v33, %v603_v7  ;;  %v634_v29 = vpack.c.bf16 %v604_v10, %v602_v8  ;;  %v586_v45 = vadd.f32 %v1853_v49, %v543_v13  ;;  %v588_v27 = vadd.f32 %v1853_v49, %v545_v16 }
  0xb4   : > { %v637_v44 = vpack.c.bf16 %v609_v19, %v607_v17  ;;  %v619_v47 = vmax.f32 %v587_v32, 0.0  ;;  %v621_v48 = vmax.f32 %v589_v35, 0.0  ;;  %v579_v51 = vadd.f32 %v1855_v0, %v536_v21 }
  0xb5   : > { %810 = vmatprep.mubr.bf16.mxu0 %v635_v25  ;;  %v581_v52 = vadd.f32 %v1855_v0, %v538_v15  ;;  %v606_v54 = vmax.f32 %v574_v22, 0.0  ;;  %v608_v56 = vmax.f32 %v576_v23, 0.0  ;;  %v618_v58 = vmax.f32 %v586_v45, 0.0 }
  0xb6   : > { %811 = vmatmul.mubr.bf16.vlgmr.msra.gmra.mxu0 %v634_v29  ;;  %v620_v37 = vmax.f32 %v588_v27, 0.0  ;;  %v643_v41 = vpack.c.bf16 %v621_v48, %v619_v47  ;;  %v611_v59 = vmax.f32 %v579_v51, 0.0  ;;  %v591_v12 = vadd.f32 %v1855_v0, %v548_v61 }
  0xb7   : > { %818 = vmatprep.mubr.bf16.mxu0 %v637_v44  ;;  %v613_v62 = vmax.f32 %v581_v52, 0.0  ;;  %v578_v39 = vadd.f32 %v1853_v49, %v535_v18  ;;  %v593_v11 = vadd.f32 %v1855_v0, %v550_v26  ;;  %v580_v13 = vadd.f32 %v1853_v49, %v537_v53 }
  0xb8   : > { %v642_v14 = vpack.c.bf16 %v620_v37, %v618_v58  ;;  %842 = vmatprep.mubr.bf16.mxu1 %v643_v41  ;;  %v623_v16 = vmax.f32 %v591_v12, 0.0  ;;  %v590_v21 = vadd.f32 %v1853_v49, %v547_v31  ;;  %v592_v15 = vadd.f32 %v1853_v49, %v549_v24 }
  0xb9   : > { %v636_v3 = vpack.c.bf16 %v608_v56, %v606_v54  ;;  %v625_v4 = vmax.f32 %v593_v11, 0.0  ;;  %v583_v61 = vadd.f32 %v1855_v0, %v540_v28  ;;  %v558_v18 = vmul.f32 %v1811_v40, %v1775_v2 }
  0xba   : > { %843 = vmatmul.mubr.bf16.vlgmr.msra.gmra.mxu1 %v642_v14  ;;  %v639_v26 = vpack.c.bf16 %v613_v62, %v611_v59  ;;  %v622_v20 = vmax.f32 %v590_v21, 0.0  ;;  %v624_v1 = vmax.f32 %v592_v15, 0.0  ;;  %v585_v55 = vadd.f32 %v1855_v0, %v542_v57 }
  0xbb   : > { %v645_v6 = vpack.c.bf16 %v625_v4, %v623_v16  ;;  %v539_v53 = vmul.f32 %v1809_v36, %v1675_v34  ;;  %v541_v31 = vmul.f32 %v1809_v36, %v1689_v42  ;;  %v595_v24 = vadd.f32 %v1855_v0, %v552_v5 }
  0xbc   : > { %v610_v9 = vmax.f32 %v578_v39, 0.0  ;;  %v612_v7 = vmax.f32 %v580_v13, 0.0  ;;  %v615_v28 = vmax.f32 %v583_v61, 0.0  ;;  %v597_v33 = vadd.f32 %v1855_v0, %v554_v38 }
  0xbd   : > { %850 = vmatprep.mubr.bf16.mxu1 %v645_v6  ;;  %v644_v2 = vpack.c.bf16 %v624_v1, %v622_v20  ;;  %v627_v40 = vmax.f32 %v595_v24, 0.0  ;;  %v594_v57 = vadd.f32 %v1853_v49, %v551_v46  ;;  %v596_v8 = vadd.f32 %v1853_v49, %v553_v43 }
  0xbe   : > { %819 = vmatmul.mubr.bf16.gmra.mxu0 %v636_v3  ;;  %v617_v34 = vmax.f32 %v585_v55, 0.0  ;;  %v629_v10 = vmax.f32 %v597_v33, 0.0  ;;  %v599_v42 = vadd.f32 %v1855_v0, %v556_v63  ;;  %v601_v5 = vadd.f32 %v1855_v0, %v558_v18 }
  0xbf   : > { %826 = vmatprep.mubr.bf16.mxu0 %v639_v26  ;;  %v582_v17 = vadd.f32 %v1853_v49, %v539_v53  ;;  %v555_v38 = vmul.f32 %v1809_v36, %v1760_v50  ;;  %v557_v22 = vmul.f32 %v1809_v36, %v1770_v60  ;;  %v638_v23 = vpack.c.bf16 %v612_v7, %v610_v9 }
  0xc0   : > { %v647_v19 = vpack.c.bf16 %v629_v10, %v627_v40  ;;  %v584_v46 = vadd.f32 %v1853_v49, %v541_v31  ;;  %v626_v25 = vmax.f32 %v594_v57, 0.0  ;;  %v628_v29 = vmax.f32 %v596_v8, 0.0 }
  0xc1   : > { %v641_v32 = vpack.c.bf16 %v617_v34, %v615_v28  ;;  %v631_v35 = vmax.f32 %v599_v42, 0.0  ;;  %v633_v44 = vmax.f32 %v601_v5, 0.0  ;;  %v614_v0 = vmax.f32 %v582_v17, 0.0 }
  0xc2   : > { %851 = vmatmul.mubr.bf16.gmra.mxu1 %v644_v2  ;;  %v616_v45 = vmax.f32 %v584_v46, 0.0  ;;  %v646_v27 = vpack.c.bf16 %v628_v29, %v626_v25  ;;  %v598_v43 = vadd.f32 %v1853_v49, %v555_v38  ;;  %v600_v50 = vadd.f32 %v1853_v49, %v557_v22 }
  0xc3   : > { %858 = vmatprep.mubr.bf16.mxu1 %v647_v19  ;;  %v649_v60 = vpack.c.bf16 %v633_v44, %v631_v35 }
  0xc4   : > { %v640_v36 = vpack.c.bf16 %v616_v45, %v614_v0  ;;  %v630_v47 = vmax.f32 %v598_v43, 0.0  ;;  %v632_v48 = vmax.f32 %v600_v50, 0.0 }
  0xc6   : > { %827 = vmatmul.mubr.bf16.gmra.mxu0 %v638_v23  ;;  %v648_v51 = vpack.c.bf16 %v632_v48, %v630_v47 }
  0xc7   : > { %834 = vmatprep.mubr.bf16.mxu0 %v641_v32 }
  0xca   : > { %859 = vmatmul.mubr.bf16.gmra.mxu1 %v646_v27 }
  0xcb   : > { %866 = vmatprep.mubr.bf16.mxu1 %v649_v60 }
  0xce   : > { %835 = vmatmul.mubr.bf16.gmra.mxu0 %v640_v36 }
  0xd2   : > { %867 = vmatmul.mubr.bf16.gmra.mxu1 %v648_v51 }
 0x176   : > { %v1166_v52 = vpop.f32.mrf.mxu0 }
 0x178   : > { %v1167_v54 = vpop.f32.mrf.mxu0 }
 0x179   : > { %v1921_v15 = vadd.f32 %v1167_v54, %v1166_v52 }
 0x17a   : > { %v1169_v56 = vpop.f32.mrf.mxu0  ;;  %v1190_v58 = vpop.f32.mrf.mxu1 }
 0x17b   : > { %v897_v55 = vmul.f32 %v1921_v15, %v1921_v15 }
 0x17c   : > { %v1170_v37 = vpop.f32.mrf.mxu0  ;;  %v1191_v41 = vpop.f32.mrf.mxu1 }
 0x17d   : > { %v1919_v13 = vadd.f32 %v1170_v37, %v1169_v56  ;;  %v1953_v44 = vadd.f32 %v1191_v41, %v1190_v58 }
 0x17e   : > { %v1172_v59 = vpop.f32.mrf.mxu0  ;;  %v1193_v62 = vpop.f32.mrf.mxu1 }
 0x17f   : > { %v898_v18 = vmul.f32 %v1919_v13, %v1919_v13  ;;  %v875_v6 = vadd.f32 %v1919_v13, %v1921_v15  ;;  %v905_v48 = vmul.f32 %v1953_v44, %v1953_v44 }
 0x180   : > { %v1173_v12 = vpop.f32.mrf.mxu0  ;;  %v1194_v49 = vpop.f32.mrf.mxu1 }
 0x181   : > { %v1923_v3 = vadd.f32 %v1173_v12, %v1172_v59  ;;  %v913_v7 = vadd.f32 %v898_v18, %v897_v55  ;;  %v1958_v43 = vadd.f32 %v1194_v49, %v1193_v62 }
 0x182   : > { %v1175_v14 = vpop.f32.mrf.mxu0  ;;  %v1196_v39 = vpop.f32.mrf.mxu1 }
 0x183   : > { %v899_v53 = vmul.f32 %v1923_v3, %v1923_v3  ;;  %v876_v28 = vadd.f32 %v1923_v3, %v875_v6  ;;  %v906_v56 = vmul.f32 %v1958_v43, %v1958_v43 }
 0x184   : > { %v1176_v11 = vpop.f32.mrf.mxu0  ;;  %v1197_v63 = vpop.f32.mrf.mxu1 }
 0x185   : > { %v1927_v26 = vadd.f32 %v1176_v11, %v1175_v14  ;;  %v914_v8 = vadd.f32 %v913_v7, %v899_v53  ;;  %v1965_v51 = vadd.f32 %v1197_v63, %v1196_v39 }
 0x186   : > { %v1178_v16 = vpop.f32.mrf.mxu0  ;;  %v1199_v21 = vpop.f32.mrf.mxu1 }
 0x187   : > { %v900_v33 = vmul.f32 %v1927_v26, %v1927_v26  ;;  %v877_v34 = vadd.f32 %v1927_v26, %v876_v28  ;;  %v907_v62 = vmul.f32 %v1965_v51, %v1965_v51 }
 0x188   : > { %v1179_v4 = vpop.f32.mrf.mxu0  ;;  %v1200_v61 = vpop.f32.mrf.mxu1 }
 0x189   : > { %v1935_v31 = vadd.f32 %v1179_v4, %v1178_v16  ;;  %v915_v17 = vadd.f32 %v914_v8, %v900_v33  ;;  %v1970_v58 = vadd.f32 %v1200_v61, %v1199_v21 }
 0x18a   : > { %v1181_v20 = vpop.f32.mrf.mxu0  ;;  %v1202_v1 = vpop.f32.mrf.mxu1 }
 0x18b   : > { %v901_v10 = vmul.f32 %v1935_v31, %v1935_v31  ;;  %v878_v19 = vadd.f32 %v1935_v31, %v877_v34  ;;  %v908_v39 = vmul.f32 %v1970_v58, %v1970_v58 }
 0x18c   : > { %v1182_v24 = vpop.f32.mrf.mxu0  ;;  %v1203_v9 = vpop.f32.mrf.mxu1 }
 0x18d   : > { %v1940_v2 = vadd.f32 %v1182_v24, %v1181_v20  ;;  %v916_v46 = vadd.f32 %v915_v17, %v901_v10  ;;  %v1975_v12 = vadd.f32 %v1203_v9, %v1202_v1 }
 0x18e   : > { %v1184_v40 = vpop.f32.mrf.mxu0  ;;  %v1205_v57 = vpop.f32.mrf.mxu1 }
 0x18f   : > { %v902_v38 = vmul.f32 %v1940_v2, %v1940_v2  ;;  %v879_v25 = vadd.f32 %v1940_v2, %v878_v19  ;;  %v909_v4 = vmul.f32 %v1975_v12, %v1975_v12 }
 0x190   : > { %v1185_v42 = vpop.f32.mrf.mxu0  ;;  %v1206_v5 = vpop.f32.mrf.mxu1 }
 0x191   : > { %v1948_v22 = vadd.f32 %v1185_v42, %v1184_v40  ;;  %v917_v0 = vadd.f32 %v916_v46, %v902_v38  ;;  %v1980_v11 = vadd.f32 %v1206_v5, %v1205_v57 }
 0x192   : > { %v1187_v23 = vpop.f32.mrf.mxu0  ;;  %v1208_v35 = vpop.f32.mrf.mxu1 }
 0x193   : > { %v903_v29 = vmul.f32 %v1948_v22, %v1948_v22  ;;  %v880_v45 = vadd.f32 %v1948_v22, %v879_v25  ;;  %v910_v55 = vmul.f32 %v1980_v11, %v1980_v11 }
 0x194   : > { %v1188_v32 = vpop.f32.mrf.mxu0  ;;  %v1209_v47 = vpop.f32.mrf.mxu1 }
 0x195   : > { %v1956_v27 = vadd.f32 %v1188_v32, %v1187_v23  ;;  %v918_v50 = vadd.f32 %v917_v0, %v903_v29  ;;  %v1210_v20 = vadd.f32 %v1209_v47, %v1208_v35 }
 0x196   : > { %v1211_v59 = vpop.f32.mrf.mxu1 }
 0x197   : > { %v881_v60 = vadd.f32 %v1956_v27, %v880_v45  ;;  %v904_v36 = vmul.f32 %v1956_v27, %v1956_v27  ;;  %v911_v7 = vmul.f32 %v1210_v20, %v1210_v20 }
 0x198   : > { %v1212_v21 = vpop.f32.mrf.mxu1 }
 0x199   : > { %v882_v52 = vadd.f32 %v1953_v44, %v881_v60  ;;  %v919_v54 = vadd.f32 %v918_v50, %v904_v36  ;;  %v1213_v53 = vadd.f32 %v1212_v21, %v1211_v59  ;;  %v937_v60 = vld [vmem:[%s308_s16] sm:$0x1] }
 0x19b   : > { %v883_v37 = vadd.f32 %v1958_v43, %v882_v52  ;;  %v920_v41 = vadd.f32 %v919_v54, %v905_v48  ;;  %v912_v40 = vmul.f32 %v1213_v53, %v1213_v53  ;;  %v941_v48 = vld [vmem:[%s311_s17] sm:$0x1] }
 0x19d   : > { %v921_v49 = vadd.f32 %v920_v41, %v906_v56  ;;  %v884_v14 = vadd.f32 %v1965_v51, %v883_v37 }
 0x19f   : > { %v885_v63 = vadd.f32 %v1970_v58, %v884_v14  ;;  %v922_v16 = vadd.f32 %v921_v49, %v907_v62 }
 0x1a1   : > { %v886_v61 = vadd.f32 %v1975_v12, %v885_v63  ;;  %v923_v18 = vadd.f32 %v922_v16, %v908_v39 }
 0x1a3   : > { %v887_v1 = vadd.f32 %v1980_v11, %v886_v61  ;;  %v924_v6 = vadd.f32 %v923_v18, %v909_v4 }
 0x1a5   : > { %v925_v24 = vadd.f32 %v924_v6, %v910_v55  ;;  %v888_v9 = vadd.f32 %v1210_v20, %v887_v1 }
 0x1a7   : > { %v926_v28 = vadd.f32 %v925_v24, %v911_v7  ;;  %v889_v33 = vadd.f32 %v1213_v53, %v888_v9 }
 0x1a9   : > { %v890_v57 = vrot.slane %v889_v33, 4  ;;  %v927_v8 = vadd.f32 %v926_v28, %v912_v40 }
 0x1ab   : > { %v891_v34 = vadd.f32 %v890_v57, %v889_v33  ;;  %v928_v10 = vrot.slane %v927_v8, 4 }
 0x1ad   : > { %v892_v42 = vrot.slane %v891_v34, 2  ;;  %v929_v5 = vadd.f32 %v928_v10, %v927_v8 }
 0x1af   : > { %v893_v17 = vadd.f32 %v892_v42, %v891_v34  ;;  %v930_v19 = vrot.slane %v929_v5, 2 }
 0x1b1   : > { %v894_v38 = vrot.slane %v893_v17, 1  ;;  %v931_v23 = vadd.f32 %v930_v19, %v929_v5 }
 0x1b3   : > { %v895_v46 = vadd.f32 %v894_v38, %v893_v17  ;;  %v932_v25 = vrot.slane %v931_v23, 1 }
 0x1b5   : > { %v896_v29 = vmul.f32 0.0078125, %v895_v46  ;;  %v933_v32 = vadd.f32 %v932_v25, %v931_v23 }
 0x1b7   : > { %v934_v35 = vmul.f32 0.0078125, %v933_v32  ;;  %v935_v0 = vmul.f32 %v896_v29, %v896_v29 }
 0x1b9   : > { %v936_v45 = vsub.f32 %v934_v35, %v935_v0 }
 0x1bb   : > { %v938_v50 = vadd.f32 1e-05, %v936_v45 }
 0x1bd   : > { %1316 = vrsqrt.f32 %v938_v50 }
 0x1ca   : > { %v1317_v36 = vpop.eup %1316 }
 0x1cb   : > { %v940_v47 = vmul.f32 %v1317_v36, %v937_v60 }
 0x1cd   : > { %v942_v52 = vmul.f32 %v940_v47, %v896_v29  ;;  %v948_v54 = vrot.slane %v940_v47, %v1806_v30 }
 0x1cf   : > { %v943_v56 = vsub.f32 %v941_v48, %v942_v52  ;;  %v965_v37 = vmul.f32 %v1213_v53, %v948_v54  ;;  %v950_v41 = vmul.f32 %v1921_v15, %v948_v54  ;;  %v951_v59 = vmul.f32 %v1919_v13, %v948_v54 }
 0x1d0   : > { %v952_v62 = vmul.f32 %v1923_v3, %v948_v54  ;;  %v953_v49 = vmul.f32 %v1927_v26, %v948_v54  ;;  %v954_v14 = vmul.f32 %v1935_v31, %v948_v54  ;;  %v955_v39 = vmul.f32 %v1940_v2, %v948_v54 }
 0x1d1   : > { %v970_v63 = vrot.slane %v943_v56, %v1806_v30  ;;  %v956_v16 = vmul.f32 %v1948_v22, %v948_v54  ;;  %v957_v21 = vmul.f32 %v1956_v27, %v948_v54  ;;  %v958_v4 = vmul.f32 %v1953_v44, %v948_v54 }
 0x1d2   : > { %v959_v15 = vmul.f32 %v1958_v43, %v948_v54  ;;  %v960_v13 = vmul.f32 %v1965_v51, %v948_v54  ;;  %v961_v3 = vmul.f32 %v1970_v58, %v948_v54  ;;  %v962_v26 = vmul.f32 %v1975_v12, %v948_v54 }
 0x1d3   : > { %v987_v31 = vadd.f32 %v970_v63, %v965_v37  ;;  %v963_v2 = vmul.f32 %v1980_v11, %v948_v54  ;;  %v964_v61 = vmul.f32 %v1210_v20, %v948_v54  ;;  %v972_v30 = vadd.f32 %v970_v63, %v950_v41 }
 0x1d4   : > { %v973_v22 = vadd.f32 %v970_v63, %v951_v59  ;;  %v974_v44 = vadd.f32 %v970_v63, %v952_v62  ;;  %v975_v27 = vadd.f32 %v970_v63, %v953_v49  ;;  %v976_v43 = vadd.f32 %v970_v63, %v954_v14 }
 0x1d5   : > { %1003 = vst [vmem:[%s2016_s12 + $0x78] sm:$0xff] %v987_v31  ;;  %v977_v51 = vadd.f32 %v970_v63, %v955_v39  ;;  %v978_v58 = vadd.f32 %v970_v63, %v956_v16  ;;  %v979_v12 = vadd.f32 %v970_v63, %v957_v21  ;;  %v980_v11 = vadd.f32 %v970_v63, %v958_v4 }
 0x1d6   : > { %988 = vst [vmem:[%s2016_s12] sm:$0xff] %v972_v30  ;;  %v981_v18 = vadd.f32 %v970_v63, %v959_v15  ;;  %v982_v20 = vadd.f32 %v970_v63, %v960_v13  ;;  %v983_v1 = vadd.f32 %v970_v63, %v961_v3  ;;  %v984_v55 = vadd.f32 %v970_v63, %v962_v26 }
 0x1d7   : > { %989 = vst [vmem:[%s2016_s12 + $0x8] sm:$0xff] %v973_v22  ;;  %990 = vst [vmem:[%s2016_s12 + $0x10] sm:$0xff] %v974_v44  ;;  %v985_v6 = vadd.f32 %v970_v63, %v963_v2  ;;  %v986_v53 = vadd.f32 %v970_v63, %v964_v61 }
 0x1d8   : > { %991 = vst [vmem:[%s2016_s12 + $0x18] sm:$0xff] %v975_v27  ;;  %992 = vst [vmem:[%s2016_s12 + $0x20] sm:$0xff] %v976_v43 }
 0x1d9   : > { %993 = vst [vmem:[%s2016_s12 + $0x28] sm:$0xff] %v977_v51  ;;  %994 = vst [vmem:[%s2016_s12 + $0x30] sm:$0xff] %v978_v58 }
 0x1da   : > { %995 = vst [vmem:[%s2016_s12 + $0x38] sm:$0xff] %v979_v12  ;;  %996 = vst [vmem:[%s2016_s12 + $0x40] sm:$0xff] %v980_v11 }
 0x1db   : > { %997 = vst [vmem:[%s2016_s12 + $0x48] sm:$0xff] %v981_v18  ;;  %998 = vst [vmem:[%s2016_s12 + $0x50] sm:$0xff] %v982_v20 }
 0x1dc   : > { %999 = vst [vmem:[%s2016_s12 + $0x58] sm:$0xff] %v983_v1  ;;  %1000 = vst [vmem:[%s2016_s12 + $0x60] sm:$0xff] %v984_v55 }
 0x1dd   : > { %1001 = vst [vmem:[%s2016_s12 + $0x68] sm:$0xff] %v985_v6  ;;  %1002 = vst [vmem:[%s2016_s12 + $0x70] sm:$0xff] %v986_v53 }
 0x1de   : > { %1385 = shalt.err (!%p1382_p5)
}
 0x1df   : > { %s1386_s28 = scalar_lea.hbm %s2024_s8, 2048  ;;  %s1390_s13 = scalar_lea.hbm %s2089_s6, 4096 }
 0x1e0   : > { %p1387_p11 = scmp.ne.s32.totalorder %s2024_s8, %s1386_s28  ;;  %p1391_p13 = scmp.lt.s32.totalorder %s2024_s8, %s2089_s6 }
 0x1e1   : > { %p1392_p4 = scmp.lt.s32.totalorder %s1390_s13, %s1386_s28 }
 0x1e2   : > { %p1388_p6 = pnand %p1387_p11, %p2106_p2 }
 0x1e3   : > { %p1393_p0 = por %p1392_p4, %p1391_p13 }
 0x1e4   : > { %p1389_p12 = pneg %p1388_p6 }
 0x1e6   : > { %p1394_p1 = pnand %p1393_p0, %p1389_p12 }
 0x1e8   : > { %1397 = shalt.err (!%p1394_p1)
}
 0x1e9   : > { %s1451_s12 = smov 128   ;;  %s1452_s25 = smov 256  }
 0x1ea   : > { %s1453_s29 = smov 8  }
 0x1eb   : > { %1236 = dma.vmem_to_hbm [thread:$0]  (%p2106_p2), %s2030_s30, 2048, %s2024_s8, %s1005_s11, %s1451_s12, %s1452_s25, %s1453_s29  }
 0x1ec PF: > { %s1032_s26 = sand.u32 1, %s1428_s21   ;;  %p2107_p3 = scmp.ne.s32.totalorder %s2098_s10, 0 }
 0x1ed   : > { %p2108_p7 = scmp.ge.s32.totalorder %s1440_s24, 2  ;;  %s1033_s19 = scalar_lea.sflag [#allocation4], %s1032_s26 }
 0x1ef   : > { %p1247_p8 = pnand %p2108_p7, %p2107_p3 }
 0x1f1   : > { %p1248_p9 = pneg %p1247_p8 }
 0x1f3   : > { %1423 = dma.done.wait (%p1248_p9), %s1033_s19, 2048  }
 0x1f4   : > { %1425 = vsyncadd (%p1248_p9), %s1033_s19, 4294965248  ;;  %s2109_s7 = sld [smem:[#allocation11_spill]]  ;;  %p20_p10 = scmp.ge.s32.totalorder %s1514_s27, 4  }
 0x1f5   : > { %s2110_s21 = smov %s1432_s22  ;;  %s2111_s22 = smov %s1436_s23 }
 0x1f6   : > { %s2113_s24 = smov %s1514_s27  ;;  %22 = sbr.rel (!%p20_p10) target bundleno = 6 (0x6), region = 100 }
 0x1fa   : > { %s2112_s23 = smov %s2109_s7 }
 0x1fb   :  { %1038 = vsyncpa [#allocation3], 1 }
 0x1fc   :  { %1040 = vsyncpa [#allocation3 + $0x1], 1 }
 0x1fd   :  { %1041 = vsyncpa [#allocation6], 1 }
 0x1fe   :  { %1043 = vsyncpa [#allocation6 + $0x1], 1 }
 0x1ff   :  { %1044 = vsyncpa [#allocation4], 1 }
 0x200   :  { %1046 = vsyncpa [#allocation4 + $0x1], 1 }

</bundles_post_ra>
